<compile_context>
chip_gen: v6e
topology: v6e:2x2x1
jax: 0.10.0
libtpu: 0.0.40
codegen_flags: <defaults>
</compile_context>

<pallas_src>
import functools
import math

import jax
import jax.numpy as jnp
from jax.experimental import pallas as pl
from jax.experimental.pallas import tpu as pltpu


def _round_up(a: int, m: int) -> int:
    return (a + m - 1) // m * m


def _pick_tile(total: int, max_tile: int, align: int) -> int:
    """Largest tile <= max_tile that is a multiple of `align` and divides `total`.
    Assumes `total` is a multiple of `align`."""
    if total <= max_tile:
        return total
    for cand in range(max_tile - max_tile % align, align - 1, -align):
        if total % cand == 0:
            return cand
    return align


# ----------------------------------------------------------------------------
# Kernels
# ----------------------------------------------------------------------------
def _linear_relu_kernel(x_ref, w_ref, b_ref, o_ref):
    # Fast path: whole K in one step -> no scratch, no pl.when gating.
    # x_ref: (tm, K) bf16, w_ref: (K, tn) bf16, b_ref: (1, tn) f32, o_ref: (tm, tn)
    acc = jnp.dot(x_ref[...], w_ref[...], preferred_element_type=jnp.float32)
    o_ref[...] = jnp.maximum(acc + b_ref[...], 0.0).astype(o_ref.dtype)


def _linear_relu_kloop_kernel(tk, x_ref, w_ref, b_ref, o_ref, acc_ref):
    # General path: K grid-tiled (innermost axis), f32 VMEM accumulator.
    # x_ref: (tm, Kp) resident across the N/K sweeps; w_ref: (tk, tn).
    k = pl.program_id(2)

    @pl.when(k == 0)
    def _():
        acc_ref[...] = jnp.zeros_like(acc_ref)

    start = pl.multiple_of(k * tk, 128)
    acc_ref[...] += jnp.dot(x_ref[:, pl.ds(start, tk)], w_ref[...],
                            preferred_element_type=jnp.float32)

    @pl.when(k == pl.num_programs(2) - 1)
    def _():
        o_ref[...] = jnp.maximum(acc_ref[...] + b_ref[...], 0.0).astype(o_ref.dtype)


# ----------------------------------------------------------------------------
# Parameter preparation (do ONCE at init, not per forward)
# ----------------------------------------------------------------------------
def prepare_dendritic_params(weight, bias, *, compute_dtype=jnp.bfloat16,
                             block_k=1024):
    """weight: (Out, In) PyTorch layout; bias: (Out,).
    Returns (w_t, b_row, out_features) with w_t pre-transposed to (In, Out_pad),
    Out padded to a lane-dense multiple of 128, K padded only if it will be
    grid-tiled, and weights cast to the compute dtype."""
    out_features, in_features = weight.shape
    assert bias.shape == (out_features,)
    w_t = jnp.transpose(weight)                       # (In, Out) -- one-time cost
    n_pad = _round_up(out_features, 128)
    if n_pad != out_features:
        w_t = jnp.pad(w_t, ((0, 0), (0, n_pad - out_features)))
        bias = jnp.pad(bias, (0, n_pad - out_features))
    if in_features > block_k:                          # only the K-tiled path needs it
        k_pad = _round_up(in_features, 128)
        if k_pad != in_features:
            w_t = jnp.pad(w_t, ((0, k_pad - in_features), (0, 0)))
    w_t = w_t.astype(compute_dtype)
    b_row = bias.astype(jnp.float32).reshape(1, n_pad)
    return w_t, b_row, out_features


# ----------------------------------------------------------------------------
# Forward
# ----------------------------------------------------------------------------
def _linear_relu(x, w_t, b_row, out_features, *, block_m=128, block_n=512,
                 block_k=1024, compute_dtype=jnp.bfloat16):
    """relu(x @ w_t + b) with w_t already in (K, N_padded) layout."""
    B, in_features = x.shape
    Kp, Np = w_t.shape
    assert Kp >= in_features and b_row.shape == (1, Np) and Np % 128 == 0
    out_dtype = x.dtype

    # Activations are per-call data: pad K only if prep padded the weight's K.
    if Kp != in_features:
        x = jnp.pad(x, ((0, 0), (0, Kp - in_features)))

    # M tiling: full-dim block (no pad) when the batch fits in one tile.
    if B <= block_m:
        tm, Mp, xp = B, B, x
    else:
        tm = block_m
        Mp = _round_up(B, tm)
        xp = jnp.pad(x, ((0, Mp - B), (0, 0))) if Mp != B else x

    tn = _pick_tile(Np, block_n, 128)
    xp = xp.astype(compute_dtype)

    cost = pl.CostEstimate(
        flops=2 * Mp * Np * Kp,
        transcendentals=0,
        bytes_accessed=(xp.size * xp.dtype.itemsize
                        + w_t.size * w_t.dtype.itemsize
                        + b_row.size * 4
                        + Mp * Np * jnp.dtype(out_dtype).itemsize))

    use_kloop = (Kp > block_k) and (Kp % 128 == 0)

    if not use_kloop:
        # Fast path: whole K in one grid step (real DendriticBranch sizes).
        grid = (Mp // tm, Np // tn)
        out = pl.pallas_call(
            _linear_relu_kernel,
            out_shape=jax.ShapeDtypeStruct((Mp, Np), out_dtype),
            grid_spec=pltpu.PrefetchScalarGridSpec(
                num_scalar_prefetch=0,
                grid=grid,
                in_specs=[
                    pl.BlockSpec((tm, Kp), lambda i, j: (i, 0)),   # x, resident over N
                    pl.BlockSpec((Kp, tn), lambda i, j: (0, j)),   # w^T tile (pre-transposed)
                    pl.BlockSpec((1, tn), lambda i, j: (0, j)),    # bias
                ],
                out_specs=pl.BlockSpec((tm, tn), lambda i, j: (i, j)),
            ),
            compiler_params=pltpu.CompilerParams(
                dimension_semantics=("parallel", "parallel")),
            cost_estimate=cost,
        )(xp, w_t, b_row)
    else:
        # General path: grid-tiled K reduction (innermost, "arbitrary"), f32 acc.
        tk = _pick_tile(Kp, block_k, 128)
        grid = (Mp // tm, Np // tn, Kp // tk)
        out = pl.pallas_call(
            functools.partial(_linear_relu_kloop_kernel, tk),
            out_shape=jax.ShapeDtypeStruct((Mp, Np), out_dtype),
            grid_spec=pltpu.PrefetchScalarGridSpec(
                num_scalar_prefetch=0,
                grid=grid,
                in_specs=[
                    pl.BlockSpec((tm, Kp), lambda i, j, k: (i, 0)),  # x resident over N & K
                    pl.BlockSpec((tk, tn), lambda i, j, k: (k, j)),  # w^T tile
                    pl.BlockSpec((1, tn), lambda i, j, k: (0, j)),   # bias
                ],
                out_specs=pl.BlockSpec((tm, tn), lambda i, j, k: (i, j)),
                scratch_shapes=[pltpu.VMEM((tm, tn), jnp.float32)],
            ),
            compiler_params=pltpu.CompilerParams(
                dimension_semantics=("parallel", "parallel", "arbitrary")),
            cost_estimate=cost,
        )(xp, w_t, b_row)

    if (Mp, Np) != (B, out_features):
        out = out[:B, :out_features]
    return out


def dendritic_branch_apply(params, x, **kw):
    """Forward with pre-prepared params (the recommended path)."""
    w_t, b_row, out_features = params
    return _linear_relu(x, w_t, b_row, out_features, **kw)


def dendritic_branch_forward(x, weight, bias, **kw):
    """Single DendriticBranch: relu(linear(x)) -- matches the PyTorch module.
    Prefer prepare_dendritic_params()+dendritic_branch_apply (prep once) or the
    fused multi-branch entry point; a standalone Out=16 call pads lanes 16->128."""
    return dendritic_branch_apply(prepare_dendritic_params(weight, bias, **{
        k: v for k, v in kw.items() if k in ("compute_dtype", "block_k")}), x, **kw)


def dendritic_branches_forward(x, weights, biases, **kw):
    """Fused evaluation of many DendriticBranch modules sharing the same input.
    weights: (n_branches, branch_size, In); biases: (n_branches, branch_size).
    Returns (B, n_branches, branch_size). All branch weights are packed along
    the lane/output dim so one lane-dense matmul covers every branch."""
    n_b, branch_size, in_features = weights.shape
    params = prepare_dendritic_params(
        weights.reshape(n_b * branch_size, in_features),
        biases.reshape(n_b * branch_size),
        **{k: v for k, v in kw.items() if k in ("compute_dtype", "block_k")})
    out = dendritic_branch_apply(params, x, **kw)
    return out.reshape(x.shape[0], n_b, branch_size)


# ----------------------------------------------------------------------------
# Demo / correctness check
# ----------------------------------------------------------------------------
if __name__ == "__main__":
    batch, input_size, branch_size, n_branches = 8, 32, 16, 8

    key = jax.random.PRNGKey(0)
    kx, kw, kb, kws, kbs, kx2, kw2, kb2 = jax.random.split(key, 8)
    bound = 1.0 / math.sqrt(input_size)

    x = jax.random.normal(kx, (batch, input_size), dtype=jnp.float32)
    weight = jax.random.uniform(kw, (branch_size, input_size),
                                minval=-bound, maxval=bound, dtype=jnp.float32)
    bias = jax.random.uniform(kb, (branch_size,),
                              minval=-bound, maxval=bound, dtype=jnp.float32)

    def ref_linear_relu(x_, w_, b_):
        # Reference with the same bf16 input rounding the kernel applies,
        # accumulated in f32 (matches MXU behaviour).
        xr = x_.astype(jnp.bfloat16).astype(jnp.float32)
        wr = w_.astype(jnp.bfloat16).astype(jnp.float32)
        return jnp.maximum(xr @ wr.T + b_, 0.0)

    # 1) Single-branch forward (original module semantics), params prepared once.
    params = prepare_dendritic_params(weight, bias)
    out = jax.block_until_ready(dendritic_branch_apply(params, x))
    ref = ref_linear_relu(x, weight, bias)
    assert out.shape == (batch, branch_size)
    assert jnp.allclose(out, ref, atol=1e-4, rtol=1e-4), float(jnp.abs(out - ref).max())

    # 2) Fused multi-branch forward: Out = 8*16 = 128 -> fully lane-dense tile.
    weights = jax.random.uniform(kws, (n_branches, branch_size, input_size),
                                 minval=-bound, maxval=bound, dtype=jnp.float32)
    biases = jax.random.uniform(kbs, (n_branches, branch_size),
                                minval=-bound, maxval=bound, dtype=jnp.float32)
    out_f = jax.block_until_ready(dendritic_branches_forward(x, weights, biases))
    ref_f = ref_linear_relu(x, weights.reshape(-1, input_size),
                            biases.reshape(-1)).reshape(batch, n_branches, branch_size)
    assert out_f.shape == (batch, n_branches, branch_size)
    assert jnp.allclose(out_f, ref_f, atol=1e-4, rtol=1e-4)

    # 3) Exercise the general K-tiled accumulator path (block_k forced small).
    in2, out2 = 256, 64
    x2 = jax.random.normal(kx2, (batch, in2), dtype=jnp.float32)
    w2 = jax.random.uniform(kw2, (out2, in2), minval=-0.1, maxval=0.1,
                            dtype=jnp.float32)
    b2 = jax.random.uniform(kb2, (out2,), minval=-0.1, maxval=0.1,
                            dtype=jnp.float32)
    p2 = prepare_dendritic_params(w2, b2, block_k=128)
    out2_v = jax.block_until_ready(dendritic_branch_apply(p2, x2, block_k=128))
    ref2 = ref_linear_relu(x2, w2, b2)
    assert out2_v.shape == (batch, out2)
    assert jnp.allclose(out2_v, ref2, atol=1e-4, rtol=1e-4)

    print("KERNEL_OK")
</pallas_src>

<mosaic_0001>
module attributes {stable_mosaic.version = 11 : i64} {
  func.func @_linear_relu_kernel(%arg0: i32, %arg1: i32, %arg2: memref<8x32xbf16, #tpu.memory_space<vmem>>, %arg3: memref<32x128xbf16, #tpu.memory_space<vmem>>, %arg4: memref<1x128xf32, #tpu.memory_space<vmem>>, %arg5: memref<8x128xf32, #tpu.memory_space<vmem>>) attributes {dimension_semantics = [#tpu.dimension_semantics<parallel>, #tpu.dimension_semantics<parallel>], iteration_bounds = array<i64: 1, 1>, scalar_prefetch = 0 : i64, scratch_operands = 0 : i64, tpu.core_type = #tpu.core_type<tc>, window_params = [{transform_indices = @transform_0, window_bounds = array<i64: 8, 32>}, {transform_indices = @transform_1, window_bounds = array<i64: 32, 128>}, {transform_indices = @transform_2, window_bounds = array<i64: 1, 128>}, {transform_indices = @transform_3, window_bounds = array<i64: 8, 128>}]} {
    %c0 = arith.constant 0 : index
    %c0_0 = arith.constant 0 : index
    %0 = vector.load %arg2[%c0, %c0_0] : memref<8x32xbf16, #tpu.memory_space<vmem>>, vector<8x32xbf16>
    %c0_1 = arith.constant 0 : index
    %c0_2 = arith.constant 0 : index
    %1 = vector.load %arg3[%c0_1, %c0_2] : memref<32x128xbf16, #tpu.memory_space<vmem>>, vector<32x128xbf16>
    %cst = arith.constant dense<0.000000e+00> : vector<8x128xf32>
    %2 = tpu.matmul %0, %1, %cst {dimension_numbers = #tpu.dot_dimension_numbers<[1], [0], [0], [1], [0, 0, 1, 1], [], []>} : vector<8x32xbf16>, vector<32x128xbf16>, vector<8x128xf32> -> vector<8x128xf32>
    %c0_3 = arith.constant 0 : index
    %c0_4 = arith.constant 0 : index
    %3 = vector.load %arg4[%c0_3, %c0_4] : memref<1x128xf32, #tpu.memory_space<vmem>>, vector<1x128xf32>
    %4 = vector.broadcast %3 : vector<1x128xf32> to vector<8x128xf32>
    %5 = arith.addf %2, %4 : vector<8x128xf32>
    %cst_5 = arith.constant 0.000000e+00 : f32
    %6 = vector.broadcast %cst_5 : f32 to vector<8x128xf32>
    %7 = arith.maximumf %5, %6 : vector<8x128xf32>
    %c0_6 = arith.constant 0 : index
    %c0_7 = arith.constant 0 : index
    %8 = vector.load %arg5[%c0_6, %c0_7] : memref<8x128xf32, #tpu.memory_space<vmem>>, vector<8x128xf32>
    tpu.vector_store %arg5[%c0_6, %c0_7], %7 {strides = array<i32>} : memref<8x128xf32, #tpu.memory_space<vmem>>, vector<8x128xf32>,
    return
  }
  func.func @transform_0(%arg0: i32, %arg1: i32) -> (i32, i32) {
    %c0_i32 = arith.constant 0 : i32
    %c0_i32_0 = arith.constant 0 : i32
    return %arg0, %c0_i32 : i32, i32
  }
  func.func @transform_1(%arg0: i32, %arg1: i32) -> (i32, i32) {
    %c0_i32 = arith.constant 0 : i32
    %c0_i32_0 = arith.constant 0 : i32
    return %c0_i32, %arg1 : i32, i32
  }
  func.func @transform_2(%arg0: i32, %arg1: i32) -> (i32, i32) {
    %c0_i32 = arith.constant 0 : i32
    %c0_i32_0 = arith.constant 0 : i32
    return %c0_i32, %arg1 : i32, i32
  }
  func.func @transform_3(%arg0: i32, %arg1: i32) -> (i32, i32) {
    %c0_i32 = arith.constant 0 : i32
    return %arg0, %arg1 : i32, i32
  }
}

</mosaic_0001>

<bundles_post_ra>
// kernel: tpu_custom_call.1
= control target key start
LH: loop header
LB: loop body
LE: loop exit
PB: predicated region body
PF: predicated region fallthrough
CT: control target
= control target key end

     0   :  { %8 = vsyncpa [#allocation3], 0  ;;  %s257_s0 = inlined_call_operand.hbm [shape: bf16[8,32], index: 0, kind: input, shape index: {}]   ;;  %s258_s1 = inlined_call_operand.hbm [shape: bf16[32,128], index: 1, kind: input, shape index: {}]   ;;  %s259_s2 = inlined_call_operand.vmem [shape: f32[1,128], index: 2, kind: input, shape index: {}]   ;;  %s260_s3 = inlined_call_operand.hbm [shape: f32[8,128], index: 3, kind: output, shape index: {}]  }
   0x1   :  { %9 = vsyncpa [#allocation6], 0 }
   0x2   :  { %10 = vsyncpa [#allocation4], 0  ;;  %s218_s12 = smov [#allocation2]   ;;  %s219_s14 = smov [#allocation5]  }
   0x3   :  { %s17_s13 = sshll.u32 %s218_s12, 4  ;;  %s26_s15 = sshll.u32 %s219_s14, 4  ;;  %s18_s13 = int_to_ptr.vmem [resolvable:$true] %s17_s13  ;;  %s27_s15 = int_to_ptr.vmem [resolvable:$true] %s26_s15 }
   0x4   :  { %s160_s16 = scalar_lea.vmem %s18_s13, 64  ;;  %p165_p1 = scmp.lt.s32.totalorder %s18_s13, %s18_s13 }
   0x5   :  { %p161_p0 = scmp.ne.s32.totalorder %s18_s13, %s160_s16  ;;  %p166_p2 = scmp.lt.s32.totalorder %s160_s16, %s160_s16 }
   0x7   :  { %p167_p3 = por %p166_p2, %p165_p1 }
   0x9   :  { %p168_p4 = pnand %p167_p3, %p161_p0 }
   0xb   :  { %171 = shalt.err (!%p168_p4)
}
   0xc   :  { %20 = dma.hbm_to_vmem [thread:$0]  %s257_s0, 64, %s18_s13, [#allocation3]  }
   0xd   :  { %s180_s19 = scalar_lea.vmem %s27_s15, 256  ;;  %p185_p6 = scmp.lt.s32.totalorder %s27_s15, %s27_s15 }
   0xe   :  { %p181_p5 = scmp.ne.s32.totalorder %s27_s15, %s180_s19  ;;  %p186_p7 = scmp.lt.s32.totalorder %s180_s19, %s180_s19 }
  0x10   :  { %p187_p8 = por %p186_p7, %p185_p6 }
  0x12   :  { %p188_p9 = pnand %p187_p8, %p181_p5 }
  0x14   :  { %191 = shalt.err (!%p188_p9)
}
  0x15   :  { %s220_s20 = smov 64   ;;  %s221_s21 = smov 4  }
  0x16   :  { %32 = dma.hbm_to_vmem [thread:$0]  %s258_s1, 256, %s27_s15, [#allocation6], %s220_s20, %s220_s20, %s221_s21  }
  0x17   :  { %212 = dma.done.wait [#allocation3], 64  }
  0x18   :  { %213 = vsyncadd [#allocation3], 4294967232 }
  0x19   :  { %214 = dma.done.wait [#allocation6], 256  }
  0x1a   :  { %215 = vsyncadd [#allocation6], 4294967040  ;;  %v222_v0 = vmov 0.0   ;;  %vm223_vm0 = vmmov 0   ;;  %v150_v1 = vld [vmem:[#allocation5 + $0x8] sm:$0xff]   ;;  %v151_v2 = vld [vmem:[#allocation5] sm:$0xff]  }
  0x1b   :  { %135 = vmatprep.subr.bf16.mxu0 %v222_v0  ;;  %139 = vmatprep.mubr.msk.bf16.mxu0 %vm223_vm0, %v222_v0  ;;  %v42_v3 = vld [vmem:[#allocation2] sm:$0xf]  ;;  %vm66_vm1 = vcmask 261120   ;;  %s224_s1 = smov [#allocation7]  }
  0x1c   :  { %136 = vmatpush3.bf16.msra.mxu0 %v150_v1  ;;  %v128_v4 = vld [vmem:[%s259_s2] ss:$0 sm:$0xff]  ;;  %s118_s25 = sshll.u32 %s224_s1, 4  ;;  %s119_s25 = int_to_ptr.vmem [resolvable:$true] %s118_s25 }
  0x1d   :  { %137 = vmatprep.subr.bf16.mxu0 %v222_v0  ;;  %s192_s26 = scalar_lea.vmem %s119_s25, 128  ;;  %p197_p11 = scmp.lt.s32.totalorder %s119_s25, %s119_s25 }
  0x1e   :  { %p193_p10 = scmp.ne.s32.totalorder %s119_s25, %s192_s26  ;;  %p198_p12 = scmp.lt.s32.totalorder %s192_s26, %s192_s26 }
  0x20   :  { %138 = vmatpush3.bf16.msra.mxu0 %v151_v2  ;;  %p199_p13 = por %p198_p12, %p197_p11 }
  0x22   :  { %p200_p0 = pnand %p199_p13, %p193_p10 }
  0x23   :  { %140 = vmatmul.mubr.msk.bf16.vlgmr.msra.gmra.mxu0 %vm66_vm1, %v42_v3 }
  0xe3   :  { %v104_v5 = vpop.f32.mrf.mxu0 }
  0xe4   :  { %v105_v6 = vadd.f32 %v128_v4, %v104_v5 }
  0xe5   :  { %v141_v7 = vpop.f32.mrf.mxu0 }
  0xe6   :  { %v110_v8 = vmax.f32 %v105_v6, 0.0 }
  0xe7   :  { %v107_v9 = vpop.f32.mrf.mxu0 }
  0xe8   :  { %111 = vst [vmem:[#allocation7] sm:$0xff] %v110_v8 }
  0xe9   :  { %v142_v10 = vpop.f32.mrf.mxu0 }
  0xea   :  { %203 = shalt.err (!%p200_p0)
}
  0xeb   :  { %121 = dma.vmem_to_hbm [thread:$0]  %s119_s25, 128, %s260_s3, [#allocation4]  }
  0xec   :  { %216 = dma.done.wait [#allocation4], 128  }
  0xed   :  { %217 = vsyncadd [#allocation4], 4294967168 }
  0xee   :  { %125 = vsyncpa [#allocation3], 1 }
  0xef   :  { %126 = vsyncpa [#allocation6], 1 }
  0xf0   :  { %127 = vsyncpa [#allocation4], 1 }

</bundles_post_ra>
